<compile_context>
chip_gen: v5e
topology: v5e:2x2
jax: 0.10.0
libtpu: 0.0.40
codegen_flags: <defaults>
</compile_context>

<pallas_src>
import jax
import jax.numpy as jnp
from jax.experimental import pallas as pl
from jax.experimental.pallas import tpu as pltpu


# --------------------------- fused kernel ------------------------------------

def make_kernel(L, B, T, D, H, O):
    eps = 1e-5

    def kernel(x_ref, bnin_ref, ball_ref, bnh_ref, blin_ref, *rest):
        # rest = [w_ihT_0, w_hhT_0, ..., w_ihT_{L-1}, w_hhT_{L-1}, w_linT, o_ref]
        wih_refs = [rest[2 * l] for l in range(L)]        # (Din_l, H) bf16
        whh_refs = [rest[2 * l + 1] for l in range(L)]    # (H, H)     bf16
        wlin_ref = rest[2 * L]                            # (H, O)     bf16
        o_ref = rest[2 * L + 1]                           # (B, O)     f32

        # ---- 1) BatchNorm1d(time): per time-channel stats over (batch, feature),
        #         train-mode biased variance, affine folded into one scale/shift ----
        x = x_ref[...].astype(jnp.float32)                          # (B, T, D)
        mu = jnp.mean(x, axis=(0, 2), keepdims=True)                # (1, T, 1)
        var = jnp.mean((x - mu) ** 2, axis=(0, 2), keepdims=True)
        gamma = bnin_ref[:, 0:1].reshape(1, T, 1)
        beta = bnin_ref[:, 1:2].reshape(1, T, 1)
        scale = gamma * jax.lax.rsqrt(var + eps)
        xn = (x - mu) * scale + beta                                # (B, T, D) f32

        # ---- per-layer recurrence: projection already holds x_t @ W_ihT + bias ----
        def run_layer(proj_at, whh_ref, collect_seq):
            w_hh = whh_ref[...]                                     # load once per layer
            h = jnp.tanh(proj_at(0))                                # h_{-1}=0 -> skip matmul
            outs = [h]
            for t in range(1, T):                                   # T=8: fully unrolled
                pre = jnp.dot(h.astype(jnp.bfloat16), w_hh,
                              preferred_element_type=jnp.float32) + proj_at(t)
                h = jnp.tanh(pre)
                outs.append(h)
            seq = jnp.concatenate(outs, axis=0) if collect_seq else None   # (T*B, H)
            return h, seq

        # ---- 2) layer 0: hoisted projection straight off the (B,T,D) block ----
        xn_flat = xn.reshape(B * T, D)                              # merge leading dims
        proj0 = jnp.dot(xn_flat.astype(jnp.bfloat16), wih_refs[0][...],
                        preferred_element_type=jnp.float32)         # (B*T, H)
        proj0 = (proj0 + ball_ref[0:1, :]).reshape(B, T, H)          # bias added ONCE
        h, seq = run_layer(lambda t: proj0[:, t, :], whh_refs[0], L > 1)

        # ---- layers 1..L-1: project whole previous-layer sequence (time-major rows) ----
        for l in range(1, L):
            proj = jnp.dot(seq.astype(jnp.bfloat16), wih_refs[l][...],
                           preferred_element_type=jnp.float32) + ball_ref[l:l + 1, :]
            h, seq = run_layer(lambda t, p=proj: p[t * B:(t + 1) * B, :],
                               whh_refs[l], l < L - 1)

        # ---- 3) z = last time step of last layer (use_mean=False) ----
        z = h                                                       # (B, H) f32

        # ---- 4) BatchNorm1d(hidden): batch stats over batch dim ----
        mu_h = jnp.mean(z, axis=0, keepdims=True)
        var_h = jnp.mean((z - mu_h) ** 2, axis=0, keepdims=True)
        zn = (z - mu_h) * (bnh_ref[0:1, :] * jax.lax.rsqrt(var_h + eps)) + bnh_ref[1:2, :]

        # ---- 5) Linear head ----
        out = jnp.dot(zn.astype(jnp.bfloat16), wlin_ref[...],
                      preferred_element_type=jnp.float32) + blin_ref[...]
        o_ref[...] = out.astype(o_ref.dtype)

    return kernel


# --------------------------- wrapper ------------------------------------------

def vanilla_rnn_forward(X, params):
    """X: (batch, time_sequence, features) float32 -> (batch, output_dim) float32."""
    B, T, D = X.shape
    layers = params["rnn"]
    L = len(layers)
    H = layers[0]["w_hhT"].shape[0]
    O = params["w_linT"].shape[1]
    # BatchNorm1d(time_sequence) requires the time axis to be dim 1 of X.
    assert params["bn_in"].shape[0] == T, "X must be (batch, time_sequence, features)"

    in_specs = [
        pl.BlockSpec((B, T, D), lambda i: (0, 0, 0)),   # X, native layout (no host transpose)
        pl.BlockSpec((T, 2), lambda i: (0, 0)),         # bn_in [gamma | beta] packed
        pl.BlockSpec((L, H), lambda i: (0, 0)),         # per-layer (b_ih + b_hh) packed
        pl.BlockSpec((2, H), lambda i: (0, 0)),         # bn_h  [gamma ; beta] packed
        pl.BlockSpec((1, O), lambda i: (0, 0)),         # linear bias
    ]
    args = [X, params["bn_in"], params["b_all"], params["bn_h"], params["b_lin"]]
    for layer in layers:
        din = layer["w_ihT"].shape[0]
        in_specs.append(pl.BlockSpec((din, H), lambda i: (0, 0)))
        in_specs.append(pl.BlockSpec((H, H), lambda i: (0, 0)))
        args += [layer["w_ihT"], layer["w_hhT"]]
    in_specs.append(pl.BlockSpec((H, O), lambda i: (0, 0)))
    args.append(params["w_linT"])

    return pl.pallas_call(
        make_kernel(L, B, T, D, H, O),
        out_shape=jax.ShapeDtypeStruct((B, O), jnp.float32),
        grid=(1,),
        in_specs=in_specs,
        out_specs=pl.BlockSpec((B, O), lambda i: (0, 0)),
        compiler_params=pltpu.CompilerParams(dimension_semantics=("arbitrary",)),
    )(*args)


# --------------------------- parameter init ------------------------------------

def init_params(key, input_size, hidden_size, num_layers, output_dim, time_sequence):
    # Shapes/distributions follow PyTorch defaults (deterministic via PRNGKey).
    H, T, O = hidden_size, time_sequence, output_dim
    bound = 1.0 / float(H) ** 0.5

    # Fresh BatchNorm: gamma=1, beta=0 (packed lane-dense).
    bn_in = jnp.stack([jnp.ones((T,), jnp.float32), jnp.zeros((T,), jnp.float32)], axis=1)
    bn_h = jnp.stack([jnp.ones((H,), jnp.float32), jnp.zeros((H,), jnp.float32)], axis=0)

    layers, b_rows = [], []
    for l in range(num_layers):
        din = input_size if l == 0 else H
        key, k1, k2, k3, k4 = jax.random.split(key, 5)
        w_ih = jax.random.uniform(k1, (H, din), jnp.float32, -bound, bound)
        w_hh = jax.random.uniform(k2, (H, H), jnp.float32, -bound, bound)
        b_ih = jax.random.uniform(k3, (H,), jnp.float32, -bound, bound)
        b_hh = jax.random.uniform(k4, (H,), jnp.float32, -bound, bound)
        # Keep W_ih / W_hh separate (layer-major restructure); store transposed + bf16.
        layers.append({"w_ihT": w_ih.T.astype(jnp.bfloat16),
                       "w_hhT": w_hh.T.astype(jnp.bfloat16)})
        b_rows.append(b_ih + b_hh)                      # combined bias, applied once per layer
    b_all = jnp.stack(b_rows, axis=0)                   # (L, H) f32

    key, k5, k6 = jax.random.split(key, 3)
    w_lin = jax.random.uniform(k5, (O, H), jnp.float32, -bound, bound)
    b_lin = jax.random.uniform(k6, (O,), jnp.float32, -bound, bound)

    return {"bn_in": bn_in, "bn_h": bn_h, "rnn": layers, "b_all": b_all,
            "w_linT": w_lin.T.astype(jnp.bfloat16), "b_lin": b_lin.reshape(1, O)}


# --------------------------- main ----------------------------------------------

if __name__ == "__main__":
    # Small shapes consistent with the module's forward:
    # batch=2, time_sequence=8, input_size=16, hidden=32, layers=2, classes=10
    B, T, D, H, L, O = 2, 8, 16, 32, 2, 10
    key = jax.random.PRNGKey(0)
    key, kx = jax.random.split(key)
    X = jax.random.normal(kx, (B, T, D), jnp.float32)
    params = init_params(key, D, H, L, O, T)

    out = jax.block_until_ready(vanilla_rnn_forward(X, params))
    assert out.shape == (B, O) and out.dtype == jnp.float32
    assert bool(jnp.all(jnp.isfinite(out)))
    # TODO(synk): BatchNorm running-mean/var buffer updates (training bookkeeping) are not
    # reproduced; they do not affect the returned forward output in train mode.
    print("KERNEL_OK")
</pallas_src>

<mosaic_0001>
module attributes {stable_mosaic.version = 11 : i64} {
  func.func @kernel(%arg0: i32, %arg1: memref<2x8x16xf32, #tpu.memory_space<vmem>>, %arg2: memref<8x2xf32, #tpu.memory_space<vmem>>, %arg3: memref<2x32xf32, #tpu.memory_space<vmem>>, %arg4: memref<2x32xf32, #tpu.memory_space<vmem>>, %arg5: memref<1x10xf32, #tpu.memory_space<vmem>>, %arg6: memref<16x32xbf16, #tpu.memory_space<vmem>>, %arg7: memref<32x32xbf16, #tpu.memory_space<vmem>>, %arg8: memref<32x32xbf16, #tpu.memory_space<vmem>>, %arg9: memref<32x32xbf16, #tpu.memory_space<vmem>>, %arg10: memref<32x10xbf16, #tpu.memory_space<vmem>>, %arg11: memref<2x10xf32, #tpu.memory_space<vmem>>) attributes {dimension_semantics = [#tpu.dimension_semantics<arbitrary>], iteration_bounds = array<i64: 1>, scalar_prefetch = 0 : i64, scratch_operands = 0 : i64, tpu.core_type = #tpu.core_type<tc>, window_params = [{pipeline_mode = #tpu.pipeline_mode<synchronous>, transform_indices = @transform_0, window_bounds = array<i64: 2, 8, 16>}, {pipeline_mode = #tpu.pipeline_mode<synchronous>, transform_indices = @transform_1, window_bounds = array<i64: 8, 2>}, {pipeline_mode = #tpu.pipeline_mode<synchronous>, transform_indices = @transform_2, window_bounds = array<i64: 2, 32>}, {pipeline_mode = #tpu.pipeline_mode<synchronous>, transform_indices = @transform_3, window_bounds = array<i64: 2, 32>}, {pipeline_mode = #tpu.pipeline_mode<synchronous>, transform_indices = @transform_4, window_bounds = array<i64: 1, 10>}, {pipeline_mode = #tpu.pipeline_mode<synchronous>, transform_indices = @transform_5, window_bounds = array<i64: 16, 32>}, {pipeline_mode = #tpu.pipeline_mode<synchronous>, transform_indices = @transform_6, window_bounds = array<i64: 32, 32>}, {pipeline_mode = #tpu.pipeline_mode<synchronous>, transform_indices = @transform_7, window_bounds = array<i64: 32, 32>}, {pipeline_mode = #tpu.pipeline_mode<synchronous>, transform_indices = @transform_8, window_bounds = array<i64: 32, 32>}, {pipeline_mode = #tpu.pipeline_mode<synchronous>, transform_indices = @transform_9, window_bounds = array<i64: 32, 10>}, {pipeline_mode = #tpu.pipeline_mode<synchronous>, transform_indices = @transform_10, window_bounds = array<i64: 2, 10>}]} {
    %c0 = arith.constant 0 : index
    %c0_0 = arith.constant 0 : index
    %c0_1 = arith.constant 0 : index
    %0 = vector.load %arg1[%c0, %c0_0, %c0_1] : memref<2x8x16xf32, #tpu.memory_space<vmem>>, vector<2x8x16xf32>
    %cst = arith.constant dense<0.000000e+00> : vector<8xf32>
    %1 = vector.multi_reduction <add>, %0, %cst [0, 2] : vector<2x8x16xf32> to vector<8xf32>
    %2 = vector.shape_cast %1 : vector<8xf32> to vector<1x8x1xf32>
    %cst_2 = arith.constant 3.200000e+01 : f32
    %3 = vector.broadcast %cst_2 : f32 to vector<1x8x1xf32>
    %4 = arith.divf %2, %3 : vector<1x8x1xf32>
    %5 = vector.broadcast %4 : vector<1x8x1xf32> to vector<2x8x16xf32>
    %6 = arith.subf %0, %5 : vector<2x8x16xf32>
    %7 = arith.mulf %6, %6 : vector<2x8x16xf32>
    %cst_3 = arith.constant dense<0.000000e+00> : vector<8xf32>
    %8 = vector.multi_reduction <add>, %7, %cst_3 [0, 2] : vector<2x8x16xf32> to vector<8xf32>
    %9 = vector.shape_cast %8 : vector<8xf32> to vector<1x8x1xf32>
    %cst_4 = arith.constant 3.200000e+01 : f32
    %10 = vector.broadcast %cst_4 : f32 to vector<1x8x1xf32>
    %11 = arith.divf %9, %10 : vector<1x8x1xf32>
    %c0_5 = arith.constant 0 : index
    %c0_6 = arith.constant 0 : index
    %12 = vector.load %arg2[%c0_5, %c0_6] : memref<8x2xf32, #tpu.memory_space<vmem>>, vector<8x1xf32>
    %13 = vector.shape_cast %12 : vector<8x1xf32> to vector<1x8x1xf32>
    %c0_7 = arith.constant 0 : index
    %c1 = arith.constant 1 : index
    %14 = vector.load %arg2[%c0_7, %c1] : memref<8x2xf32, #tpu.memory_space<vmem>>, vector<8x1xf32>
    %15 = vector.shape_cast %14 : vector<8x1xf32> to vector<1x8x1xf32>
    %cst_8 = arith.constant 9.99999974E-6 : f32
    %16 = vector.broadcast %cst_8 : f32 to vector<1x8x1xf32>
    %17 = arith.addf %11, %16 : vector<1x8x1xf32>
    %18 = math.rsqrt %17 : vector<1x8x1xf32>
    %19 = arith.mulf %13, %18 : vector<1x8x1xf32>
    %20 = vector.broadcast %4 : vector<1x8x1xf32> to vector<2x8x16xf32>
    %21 = arith.subf %0, %20 : vector<2x8x16xf32>
    %22 = vector.broadcast %19 : vector<1x8x1xf32> to vector<2x8x16xf32>
    %23 = arith.mulf %21, %22 : vector<2x8x16xf32>
    %24 = vector.broadcast %15 : vector<1x8x1xf32> to vector<2x8x16xf32>
    %25 = arith.addf %23, %24 : vector<2x8x16xf32>
    %26 = vector.shape_cast %25 : vector<2x8x16xf32> to vector<16x16xf32>
    %27 = arith.truncf %26 : vector<16x16xf32> to vector<16x16xbf16>
    %c0_9 = arith.constant 0 : index
    %c0_10 = arith.constant 0 : index
    %28 = vector.load %arg6[%c0_9, %c0_10] : memref<16x32xbf16, #tpu.memory_space<vmem>>, vector<16x32xbf16>
    %cst_11 = arith.constant dense<0.000000e+00> : vector<16x32xf32>
    %29 = tpu.matmul %27, %28, %cst_11 {dimension_numbers = #tpu.dot_dimension_numbers<[1], [0], [0], [1], [0, 0, 1, 1], [], []>} : vector<16x16xbf16>, vector<16x32xbf16>, vector<16x32xf32> -> vector<16x32xf32>
    %c0_12 = arith.constant 0 : index
    %c0_13 = arith.constant 0 : index
    %30 = vector.load %arg3[%c0_12, %c0_13] : memref<2x32xf32, #tpu.memory_space<vmem>>, vector<1x32xf32>
    %31 = vector.broadcast %30 : vector<1x32xf32> to vector<16x32xf32>
    %32 = arith.addf %29, %31 : vector<16x32xf32>
    %33 = vector.shape_cast %32 : vector<16x32xf32> to vector<2x8x32xf32>
    %c0_14 = arith.constant 0 : index
    %c0_15 = arith.constant 0 : index
    %34 = vector.load %arg7[%c0_14, %c0_15] : memref<32x32xbf16, #tpu.memory_space<vmem>>, vector<32x32xbf16>
    %35 = vector.extract_strided_slice %33 {offsets = [0, 0, 0], sizes = [2, 1, 32], strides = [1, 1, 1]} : vector<2x8x32xf32> to vector<2x1x32xf32>
    %36 = vector.shape_cast %35 : vector<2x1x32xf32> to vector<2x32xf32>
    %37 = math.tanh %36 : vector<2x32xf32>
    %38 = arith.truncf %37 : vector<2x32xf32> to vector<2x32xbf16>
    %cst_16 = arith.constant dense<0.000000e+00> : vector<2x32xf32>
    %39 = tpu.matmul %38, %34, %cst_16 {dimension_numbers = #tpu.dot_dimension_numbers<[1], [0], [0], [1], [0, 0, 1, 1], [], []>} : vector<2x32xbf16>, vector<32x32xbf16>, vector<2x32xf32> -> vector<2x32xf32>
    %40 = vector.extract_strided_slice %33 {offsets = [0, 1, 0], sizes = [2, 1, 32], strides = [1, 1, 1]} : vector<2x8x32xf32> to vector<2x1x32xf32>
    %41 = vector.shape_cast %40 : vector<2x1x32xf32> to vector<2x32xf32>
    %42 = arith.addf %39, %41 : vector<2x32xf32>
    %43 = math.tanh %42 : vector<2x32xf32>
    %44 = arith.truncf %43 : vector<2x32xf32> to vector<2x32xbf16>
    %cst_17 = arith.constant dense<0.000000e+00> : vector<2x32xf32>
    %45 = tpu.matmul %44, %34, %cst_17 {dimension_numbers = #tpu.dot_dimension_numbers<[1], [0], [0], [1], [0, 0, 1, 1], [], []>} : vector<2x32xbf16>, vector<32x32xbf16>, vector<2x32xf32> -> vector<2x32xf32>
    %46 = vector.extract_strided_slice %33 {offsets = [0, 2, 0], sizes = [2, 1, 32], strides = [1, 1, 1]} : vector<2x8x32xf32> to vector<2x1x32xf32>
    %47 = vector.shape_cast %46 : vector<2x1x32xf32> to vector<2x32xf32>
    %48 = arith.addf %45, %47 : vector<2x32xf32>
    %49 = math.tanh %48 : vector<2x32xf32>
    %50 = arith.truncf %49 : vector<2x32xf32> to vector<2x32xbf16>
    %cst_18 = arith.constant dense<0.000000e+00> : vector<2x32xf32>
    %51 = tpu.matmul %50, %34, %cst_18 {dimension_numbers = #tpu.dot_dimension_numbers<[1], [0], [0], [1], [0, 0, 1, 1], [], []>} : vector<2x32xbf16>, vector<32x32xbf16>, vector<2x32xf32> -> vector<2x32xf32>
    %52 = vector.extract_strided_slice %33 {offsets = [0, 3, 0], sizes = [2, 1, 32], strides = [1, 1, 1]} : vector<2x8x32xf32> to vector<2x1x32xf32>
    %53 = vector.shape_cast %52 : vector<2x1x32xf32> to vector<2x32xf32>
    %54 = arith.addf %51, %53 : vector<2x32xf32>
    %55 = math.tanh %54 : vector<2x32xf32>
    %56 = arith.truncf %55 : vector<2x32xf32> to vector<2x32xbf16>
    %cst_19 = arith.constant dense<0.000000e+00> : vector<2x32xf32>
    %57 = tpu.matmul %56, %34, %cst_19 {dimension_numbers = #tpu.dot_dimension_numbers<[1], [0], [0], [1], [0, 0, 1, 1], [], []>} : vector<2x32xbf16>, vector<32x32xbf16>, vector<2x32xf32> -> vector<2x32xf32>
    %58 = vector.extract_strided_slice %33 {offsets = [0, 4, 0], sizes = [2, 1, 32], strides = [1, 1, 1]} : vector<2x8x32xf32> to vector<2x1x32xf32>
    %59 = vector.shape_cast %58 : vector<2x1x32xf32> to vector<2x32xf32>
    %60 = arith.addf %57, %59 : vector<2x32xf32>
    %61 = math.tanh %60 : vector<2x32xf32>
    %62 = arith.truncf %61 : vector<2x32xf32> to vector<2x32xbf16>
    %cst_20 = arith.constant dense<0.000000e+00> : vector<2x32xf32>
    %63 = tpu.matmul %62, %34, %cst_20 {dimension_numbers = #tpu.dot_dimension_numbers<[1], [0], [0], [1], [0, 0, 1, 1], [], []>} : vector<2x32xbf16>, vector<32x32xbf16>, vector<2x32xf32> -> vector<2x32xf32>
    %64 = vector.extract_strided_slice %33 {offsets = [0, 5, 0], sizes = [2, 1, 32], strides = [1, 1, 1]} : vector<2x8x32xf32> to vector<2x1x32xf32>
    %65 = vector.shape_cast %64 : vector<2x1x32xf32> to vector<2x32xf32>
    %66 = arith.addf %63, %65 : vector<2x32xf32>
    %67 = math.tanh %66 : vector<2x32xf32>
    %68 = arith.truncf %67 : vector<2x32xf32> to vector<2x32xbf16>
    %cst_21 = arith.constant dense<0.000000e+00> : vector<2x32xf32>
    %69 = tpu.matmul %68, %34, %cst_21 {dimension_numbers = #tpu.dot_dimension_numbers<[1], [0], [0], [1], [0, 0, 1, 1], [], []>} : vector<2x32xbf16>, vector<32x32xbf16>, vector<2x32xf32> -> vector<2x32xf32>
    %70 = vector.extract_strided_slice %33 {offsets = [0, 6, 0], sizes = [2, 1, 32], strides = [1, 1, 1]} : vector<2x8x32xf32> to vector<2x1x32xf32>
    %71 = vector.shape_cast %70 : vector<2x1x32xf32> to vector<2x32xf32>
    %72 = arith.addf %69, %71 : vector<2x32xf32>
    %73 = math.tanh %72 : vector<2x32xf32>
    %74 = arith.truncf %73 : vector<2x32xf32> to vector<2x32xbf16>
    %cst_22 = arith.constant dense<0.000000e+00> : vector<2x32xf32>
    %75 = tpu.matmul %74, %34, %cst_22 {dimension_numbers = #tpu.dot_dimension_numbers<[1], [0], [0], [1], [0, 0, 1, 1], [], []>} : vector<2x32xbf16>, vector<32x32xbf16>, vector<2x32xf32> -> vector<2x32xf32>
    %76 = vector.extract_strided_slice %33 {offsets = [0, 7, 0], sizes = [2, 1, 32], strides = [1, 1, 1]} : vector<2x8x32xf32> to vector<2x1x32xf32>
    %77 = vector.shape_cast %76 : vector<2x1x32xf32> to vector<2x32xf32>
    %78 = arith.addf %75, %77 : vector<2x32xf32>
    %79 = math.tanh %78 : vector<2x32xf32>
    %80 = tpu.concatenate %37, %43, %49, %55, %61, %67, %73, %79 in 0 : vector<2x32xf32>, vector<2x32xf32>, vector<2x32xf32>, vector<2x32xf32>, vector<2x32xf32>, vector<2x32xf32>, vector<2x32xf32>, vector<2x32xf32> -> vector<16x32xf32>
    %81 = arith.truncf %80 : vector<16x32xf32> to vector<16x32xbf16>
    %c0_23 = arith.constant 0 : index
    %c0_24 = arith.constant 0 : index
    %82 = vector.load %arg8[%c0_23, %c0_24] : memref<32x32xbf16, #tpu.memory_space<vmem>>, vector<32x32xbf16>
    %cst_25 = arith.constant dense<0.000000e+00> : vector<16x32xf32>
    %83 = tpu.matmul %81, %82, %cst_25 {dimension_numbers = #tpu.dot_dimension_numbers<[1], [0], [0], [1], [0, 0, 1, 1], [], []>} : vector<16x32xbf16>, vector<32x32xbf16>, vector<16x32xf32> -> vector<16x32xf32>
    %c1_26 = arith.constant 1 : index
    %c0_27 = arith.constant 0 : index
    %84 = vector.load %arg3[%c1_26, %c0_27] : memref<2x32xf32, #tpu.memory_space<vmem>>, vector<1x32xf32>
    %85 = vector.broadcast %84 : vector<1x32xf32> to vector<16x32xf32>
    %86 = arith.addf %83, %85 : vector<16x32xf32>
    %c0_28 = arith.constant 0 : index
    %c0_29 = arith.constant 0 : index
    %87 = vector.load %arg9[%c0_28, %c0_29] : memref<32x32xbf16, #tpu.memory_space<vmem>>, vector<32x32xbf16>
    %88 = vector.extract_strided_slice %86 {offsets = [0, 0], sizes = [2, 32], strides = [1, 1]} : vector<16x32xf32> to vector<2x32xf32>
    %89 = math.tanh %88 : vector<2x32xf32>
    %90 = arith.truncf %89 : vector<2x32xf32> to vector<2x32xbf16>
    %cst_30 = arith.constant dense<0.000000e+00> : vector<2x32xf32>
    %91 = tpu.matmul %90, %87, %cst_30 {dimension_numbers = #tpu.dot_dimension_numbers<[1], [0], [0], [1], [0, 0, 1, 1], [], []>} : vector<2x32xbf16>, vector<32x32xbf16>, vector<2x32xf32> -> vector<2x32xf32>
    %92 = vector.extract_strided_slice %86 {offsets = [2, 0], sizes = [2, 32], strides = [1, 1]} : vector<16x32xf32> to vector<2x32xf32>
    %93 = arith.addf %91, %92 : vector<2x32xf32>
    %94 = math.tanh %93 : vector<2x32xf32>
    %95 = arith.truncf %94 : vector<2x32xf32> to vector<2x32xbf16>
    %cst_31 = arith.constant dense<0.000000e+00> : vector<2x32xf32>
    %96 = tpu.matmul %95, %87, %cst_31 {dimension_numbers = #tpu.dot_dimension_numbers<[1], [0], [0], [1], [0, 0, 1, 1], [], []>} : vector<2x32xbf16>, vector<32x32xbf16>, vector<2x32xf32> -> vector<2x32xf32>
    %97 = vector.extract_strided_slice %86 {offsets = [4, 0], sizes = [2, 32], strides = [1, 1]} : vector<16x32xf32> to vector<2x32xf32>
    %98 = arith.addf %96, %97 : vector<2x32xf32>
    %99 = math.tanh %98 : vector<2x32xf32>
    %100 = arith.truncf %99 : vector<2x32xf32> to vector<2x32xbf16>
    %cst_32 = arith.constant dense<0.000000e+00> : vector<2x32xf32>
    %101 = tpu.matmul %100, %87, %cst_32 {dimension_numbers = #tpu.dot_dimension_numbers<[1], [0], [0], [1], [0, 0, 1, 1], [], []>} : vector<2x32xbf16>, vector<32x32xbf16>, vector<2x32xf32> -> vector<2x32xf32>
    %102 = vector.extract_strided_slice %86 {offsets = [6, 0], sizes = [2, 32], strides = [1, 1]} : vector<16x32xf32> to vector<2x32xf32>
    %103 = arith.addf %101, %102 : vector<2x32xf32>
    %104 = math.tanh %103 : vector<2x32xf32>
    %105 = arith.truncf %104 : vector<2x32xf32> to vector<2x32xbf16>
    %cst_33 = arith.constant dense<0.000000e+00> : vector<2x32xf32>
    %106 = tpu.matmul %105, %87, %cst_33 {dimension_numbers = #tpu.dot_dimension_numbers<[1], [0], [0], [1], [0, 0, 1, 1], [], []>} : vector<2x32xbf16>, vector<32x32xbf16>, vector<2x32xf32> -> vector<2x32xf32>
    %107 = vector.extract_strided_slice %86 {offsets = [8, 0], sizes = [2, 32], strides = [1, 1]} : vector<16x32xf32> to vector<2x32xf32>
    %108 = arith.addf %106, %107 : vector<2x32xf32>
    %109 = math.tanh %108 : vector<2x32xf32>
    %110 = arith.truncf %109 : vector<2x32xf32> to vector<2x32xbf16>
    %cst_34 = arith.constant dense<0.000000e+00> : vector<2x32xf32>
    %111 = tpu.matmul %110, %87, %cst_34 {dimension_numbers = #tpu.dot_dimension_numbers<[1], [0], [0], [1], [0, 0, 1, 1], [], []>} : vector<2x32xbf16>, vector<32x32xbf16>, vector<2x32xf32> -> vector<2x32xf32>
    %112 = vector.extract_strided_slice %86 {offsets = [10, 0], sizes = [2, 32], strides = [1, 1]} : vector<16x32xf32> to vector<2x32xf32>
    %113 = arith.addf %111, %112 : vector<2x32xf32>
    %114 = math.tanh %113 : vector<2x32xf32>
    %115 = arith.truncf %114 : vector<2x32xf32> to vector<2x32xbf16>
    %cst_35 = arith.constant dense<0.000000e+00> : vector<2x32xf32>
    %116 = tpu.matmul %115, %87, %cst_35 {dimension_numbers = #tpu.dot_dimension_numbers<[1], [0], [0], [1], [0, 0, 1, 1], [], []>} : vector<2x32xbf16>, vector<32x32xbf16>, vector<2x32xf32> -> vector<2x32xf32>
    %117 = vector.extract_strided_slice %86 {offsets = [12, 0], sizes = [2, 32], strides = [1, 1]} : vector<16x32xf32> to vector<2x32xf32>
    %118 = arith.addf %116, %117 : vector<2x32xf32>
    %119 = math.tanh %118 : vector<2x32xf32>
    %120 = arith.truncf %119 : vector<2x32xf32> to vector<2x32xbf16>
    %cst_36 = arith.constant dense<0.000000e+00> : vector<2x32xf32>
    %121 = tpu.matmul %120, %87, %cst_36 {dimension_numbers = #tpu.dot_dimension_numbers<[1], [0], [0], [1], [0, 0, 1, 1], [], []>} : vector<2x32xbf16>, vector<32x32xbf16>, vector<2x32xf32> -> vector<2x32xf32>
    %122 = vector.extract_strided_slice %86 {offsets = [14, 0], sizes = [2, 32], strides = [1, 1]} : vector<16x32xf32> to vector<2x32xf32>
    %123 = arith.addf %121, %122 : vector<2x32xf32>
    %124 = math.tanh %123 : vector<2x32xf32>
    %cst_37 = arith.constant dense<0.000000e+00> : vector<32xf32>
    %125 = vector.multi_reduction <add>, %124, %cst_37 [0] : vector<2x32xf32> to vector<32xf32>
    %126 = vector.shape_cast %125 : vector<32xf32> to vector<1x32xf32>
    %cst_38 = arith.constant 2.000000e+00 : f32
    %127 = vector.broadcast %cst_38 : f32 to vector<1x32xf32>
    %128 = arith.divf %126, %127 : vector<1x32xf32>
    %129 = vector.broadcast %128 : vector<1x32xf32> to vector<2x32xf32>
    %130 = arith.subf %124, %129 : vector<2x32xf32>
    %131 = arith.mulf %130, %130 : vector<2x32xf32>
    %cst_39 = arith.constant dense<0.000000e+00> : vector<32xf32>
    %132 = vector.multi_reduction <add>, %131, %cst_39 [0] : vector<2x32xf32> to vector<32xf32>
    %133 = vector.shape_cast %132 : vector<32xf32> to vector<1x32xf32>
    %cst_40 = arith.constant 2.000000e+00 : f32
    %134 = vector.broadcast %cst_40 : f32 to vector<1x32xf32>
    %135 = arith.divf %133, %134 : vector<1x32xf32>
    %136 = vector.broadcast %128 : vector<1x32xf32> to vector<2x32xf32>
    %137 = arith.subf %124, %136 : vector<2x32xf32>
    %c0_41 = arith.constant 0 : index
    %c0_42 = arith.constant 0 : index
    %138 = vector.load %arg4[%c0_41, %c0_42] : memref<2x32xf32, #tpu.memory_space<vmem>>, vector<1x32xf32>
    %cst_43 = arith.constant 9.99999974E-6 : f32
    %139 = vector.broadcast %cst_43 : f32 to vector<1x32xf32>
    %140 = arith.addf %135, %139 : vector<1x32xf32>
    %141 = math.rsqrt %140 : vector<1x32xf32>
    %142 = arith.mulf %138, %141 : vector<1x32xf32>
    %143 = vector.broadcast %142 : vector<1x32xf32> to vector<2x32xf32>
    %144 = arith.mulf %137, %143 : vector<2x32xf32>
    %c1_44 = arith.constant 1 : index
    %c0_45 = arith.constant 0 : index
    %145 = vector.load %arg4[%c1_44, %c0_45] : memref<2x32xf32, #tpu.memory_space<vmem>>, vector<1x32xf32>
    %146 = vector.broadcast %145 : vector<1x32xf32> to vector<2x32xf32>
    %147 = arith.addf %144, %146 : vector<2x32xf32>
    %148 = arith.truncf %147 : vector<2x32xf32> to vector<2x32xbf16>
    %c0_46 = arith.constant 0 : index
    %c0_47 = arith.constant 0 : index
    %149 = vector.load %arg10[%c0_46, %c0_47] : memref<32x10xbf16, #tpu.memory_space<vmem>>, vector<32x10xbf16>
    %cst_48 = arith.constant dense<0.000000e+00> : vector<2x10xf32>
    %150 = tpu.matmul %148, %149, %cst_48 {dimension_numbers = #tpu.dot_dimension_numbers<[1], [0], [0], [1], [0, 0, 1, 1], [], []>} : vector<2x32xbf16>, vector<32x10xbf16>, vector<2x10xf32> -> vector<2x10xf32>
    %c0_49 = arith.constant 0 : index
    %c0_50 = arith.constant 0 : index
    %151 = vector.load %arg5[%c0_49, %c0_50] : memref<1x10xf32, #tpu.memory_space<vmem>>, vector<1x10xf32>
    %152 = vector.broadcast %151 : vector<1x10xf32> to vector<2x10xf32>
    %153 = arith.addf %150, %152 : vector<2x10xf32>
    %c0_51 = arith.constant 0 : index
    %c0_52 = arith.constant 0 : index
    %154 = vector.load %arg11[%c0_51, %c0_52] : memref<2x10xf32, #tpu.memory_space<vmem>>, vector<2x10xf32>
    tpu.vector_store %arg11[%c0_51, %c0_52], %153 {strides = array<i32>} : memref<2x10xf32, #tpu.memory_space<vmem>>, vector<2x10xf32>,
    return
  }
  func.func @transform_0(%arg0: i32) -> (i32, i32, i32) {
    %c0_i32 = arith.constant 0 : i32
    %c0_i32_0 = arith.constant 0 : i32
    %c0_i32_1 = arith.constant 0 : i32
    %c0_i32_2 = arith.constant 0 : i32
    return %c0_i32, %c0_i32_0, %c0_i32_1 : i32, i32, i32
  }
  func.func @transform_1(%arg0: i32) -> (i32, i32) {
    %c0_i32 = arith.constant 0 : i32
    %c0_i32_0 = arith.constant 0 : i32
    %c0_i32_1 = arith.constant 0 : i32
    return %c0_i32, %c0_i32_0 : i32, i32
  }
  func.func @transform_2(%arg0: i32) -> (i32, i32) {
    %c0_i32 = arith.constant 0 : i32
    %c0_i32_0 = arith.constant 0 : i32
    %c0_i32_1 = arith.constant 0 : i32
    return %c0_i32, %c0_i32_0 : i32, i32
  }
  func.func @transform_3(%arg0: i32) -> (i32, i32) {
    %c0_i32 = arith.constant 0 : i32
    %c0_i32_0 = arith.constant 0 : i32
    %c0_i32_1 = arith.constant 0 : i32
    return %c0_i32, %c0_i32_0 : i32, i32
  }
  func.func @transform_4(%arg0: i32) -> (i32, i32) {
    %c0_i32 = arith.constant 0 : i32
    %c0_i32_0 = arith.constant 0 : i32
    %c0_i32_1 = arith.constant 0 : i32
    return %c0_i32, %c0_i32_0 : i32, i32
  }
  func.func @transform_5(%arg0: i32) -> (i32, i32) {
    %c0_i32 = arith.constant 0 : i32
    %c0_i32_0 = arith.constant 0 : i32
    %c0_i32_1 = arith.constant 0 : i32
    return %c0_i32, %c0_i32_0 : i32, i32
  }
  func.func @transform_6(%arg0: i32) -> (i32, i32) {
    %c0_i32 = arith.constant 0 : i32
    %c0_i32_0 = arith.constant 0 : i32
    %c0_i32_1 = arith.constant 0 : i32
    return %c0_i32, %c0_i32_0 : i32, i32
  }
  func.func @transform_7(%arg0: i32) -> (i32, i32) {
    %c0_i32 = arith.constant 0 : i32
    %c0_i32_0 = arith.constant 0 : i32
    %c0_i32_1 = arith.constant 0 : i32
    return %c0_i32, %c0_i32_0 : i32, i32
  }
  func.func @transform_8(%arg0: i32) -> (i32, i32) {
    %c0_i32 = arith.constant 0 : i32
    %c0_i32_0 = arith.constant 0 : i32
    %c0_i32_1 = arith.constant 0 : i32
    return %c0_i32, %c0_i32_0 : i32, i32
  }
  func.func @transform_9(%arg0: i32) -> (i32, i32) {
    %c0_i32 = arith.constant 0 : i32
    %c0_i32_0 = arith.constant 0 : i32
    %c0_i32_1 = arith.constant 0 : i32
    return %c0_i32, %c0_i32_0 : i32, i32
  }
  func.func @transform_10(%arg0: i32) -> (i32, i32) {
    %c0_i32 = arith.constant 0 : i32
    %c0_i32_0 = arith.constant 0 : i32
    %c0_i32_1 = arith.constant 0 : i32
    return %c0_i32, %c0_i32_0 : i32, i32
  }
}

</mosaic_0001>

<bundles_post_ra>
// kernel: tpu_custom_call.1
= control target key start
LH: loop header
LB: loop body
LE: loop exit
PB: predicated region body
PF: predicated region fallthrough
CT: control target
= control target key end

     0   :  { %15 = vsyncpa [#allocation3], 0  ;;  %s1048_s0 = inlined_call_operand.vmem [shape: f32[2,8,16], index: 0, kind: input, shape index: {}]   ;;  %s1049_s1 = inlined_call_operand.vmem [shape: f32[8,2], index: 1, kind: input, shape index: {}]   ;;  %s1050_s2 = inlined_call_operand.vmem [shape: f32[2,32], index: 2, kind: input, shape index: {}]   ;;  %s1051_s3 = inlined_call_operand.vmem [shape: f32[2,32], index: 3, kind: input, shape index: {}]   ;;  %s1052_s4 = inlined_call_operand.vmem [shape: f32[1,10], index: 4, kind: input, shape index: {}]   ;;  %s1053_s5 = inlined_call_operand.vmem [shape: bf16[16,32], index: 5, kind: input, shape index: {}]   ;;  %s1054_s6 = inlined_call_operand.hbm [shape: bf16[32,32], index: 6, kind: input, shape index: {}]   ;;  %s1055_s7 = inlined_call_operand.hbm [shape: bf16[32,32], index: 7, kind: input, shape index: {}]   ;;  %s1056_s8 = inlined_call_operand.hbm [shape: bf16[32,32], index: 8, kind: input, shape index: {}]   ;;  %s1057_s9 = inlined_call_operand.vmem [shape: bf16[32,10], index: 9, kind: input, shape index: {}]   ;;  %s1058_s10 = inlined_call_operand.hbm [shape: f32[2,10], index: 10, kind: output, shape index: {}]  }
   0x1   :  { %16 = vsyncpa [#allocation6], 0 }
   0x2   :  { %17 = vsyncpa [#allocation4], 0  ;;  %s47_s15 = sshll.u32 %s1055_s7, 4  ;;  %s897_s16 = smov [#allocation5]   ;;  %s48_s15 = int_to_ptr.hbm [resolvable:$true] %s47_s15 }
   0x3   :  { %s49_s17 = sshll.u32 %s897_s16, 4  ;;  %s34_s20 = sshll.u32 %s1054_s6, 4  ;;  %s50_s17 = int_to_ptr.vmem [resolvable:$true] %s49_s17  ;;  %s35_s20 = int_to_ptr.hbm [resolvable:$true] %s34_s20 }
   0x4   :  { %s898_s21 = smov 64   ;;  %s899_s22 = smov 4  }
   0x5   :  { %55 = dma.hbm_to_vmem [thread:$0]  %s48_s15, 256, %s50_s17, [#allocation6], %s898_s21, %s898_s21, %s899_s22  }
   0x6   :  { %s900_s23 = smov [#allocation2]   ;;  %s60_s27 = sshll.u32 %s1056_s8, 4  ;;  %s61_s27 = int_to_ptr.hbm [resolvable:$true] %s60_s27 }
   0x7   :  { %s36_s24 = sshll.u32 %s900_s23, 4  ;;  %s901_s7 = smov [#allocation7]   ;;  %s37_s24 = int_to_ptr.vmem [resolvable:$true] %s36_s24 }
   0x8   :  { %42 = dma.hbm_to_vmem [thread:$0]  %s35_s20, 256, %s37_s24, [#allocation3], %s898_s21, %s898_s21, %s899_s22  }
   0x9   :  { %s62_s28 = sshll.u32 %s901_s7, 4  ;;  %s63_s28 = int_to_ptr.vmem [resolvable:$true] %s62_s28 }
   0xa   :  { %68 = dma.hbm_to_vmem [thread:$0]  %s61_s27, 256, %s63_s28, [#allocation6], %s898_s21, %s898_s21, %s899_s22  }
   0xb   :  { %891 = dma.done.wait [#allocation3], 256  }
   0xc   :  { %892 = vsyncadd [#allocation3], 4294967040 }
   0xd   :  { %893 = dma.done.wait [#allocation6], 512  }
   0xe   :  { %894 = vsyncadd [#allocation6], 4294966784  ;;  %vm86_vm0 = vcmask 130048   ;;  %v84_v0 = vld [vmem:[%s1048_s0] sm:$0xff]  ;;  %v85_v1 = vld [vmem:[%s1048_s0 + $0x8] sm:$0xff]  ;;  %v902_v5 = vmov 32.0  }
   0xf   :  { %v87_v2 = vsel %vm86_vm0, %v84_v0, 0.0  ;;  %v88_v3 = vsel %vm86_vm0, %v85_v1, 0.0  ;;  %753 = vrcp.f32 %v902_v5  ;;  %v903_v21 = vmov 0   ;;  %v110_v31 = vld [vmem:[%s1049_s1] sm:$0xff]  ;;  %v729_v43 = vld [vmem:[#allocation2 + $0x8] sm:$0xff]  ;;  %s906_s24 = smov [#allocation8]  }
  0x10   :  { %v89_v4 = vadd.f32 %v88_v3, %v87_v2  ;;  %746 = vset.pattern.permute.xlu1 %v903_v21  ;;  %v904_v22 = vmov 1   ;;  %v727_v35 = vld [vmem:[%s1053_s5] sm:$0xff]  ;;  %208 = vmatpush.bf16.msra.mxu1 %v729_v43  ;;  %vm178_vm5 = vcmask 1041409   ;;  %vm198_vm6 = vcmask 261120   ;;  %s661_s25 = sshll.u32 %s906_s24, 4  ;;  %s663_s7 = sshll.u32 %s1058_s10, 4  ;;  %s662_s25 = int_to_ptr.vmem [resolvable:$true] %s661_s25  ;;  %s664_s7 = int_to_ptr.hbm [resolvable:$true] %s663_s7 }
  0x11   :  { %748 = vset.pattern.permute.xlu0 %v904_v22  ;;  %158 = vmatpush.bf16.msra.mxu0 %v727_v35  ;;  %v728_v44 = vld [vmem:[#allocation2] sm:$0xff]  ;;  %vm371_vm7 = vcmask 1041408   ;;  %vm373_vm8 = vcmask 1043456   ;;  %vm375_vm9 = vcmask 1045504   ;;  %vm573_vm10 = vcmask 254976  }
  0x12   :  { %90 = vadd.xlane.f32.xlu0 %v89_v4  ;;  %230 = vmatpush.bf16.msra.mxu2 %v729_v43  ;;  %v749_v46 = vld [vmem:[%s1050_s2] ss:$0 sm:$0xff]  ;;  %vm654_vm15 = vcmask 74752  }
  0x13   :  { %252 = vmatpush.bf16.msra.mxu3 %v729_v43 }
  0x14   :  { %209 = vmatpush.bf16.msra.mxu1 %v728_v44 }
  0x15   :  { %v754_v6 = vpop.eup %753  ;;  %274 = vmatpush.bf16.msrb.mxu0 %v729_v43 }
  0x16   :  { %v93_v7 = vmul.f32 32.0, %v754_v6  ;;  %vm97_vm1 = vweird.f32 %v754_v6  ;;  %231 = vmatpush.bf16.msra.mxu2 %v728_v44 }
  0x17   :  { %253 = vmatpush.bf16.msra.mxu3 %v728_v44 }
  0x18   :  { %v94_v8 = vsub.f32 1.0, %v93_v7  ;;  %296 = vmatpush.bf16.msrb.mxu1 %v729_v43 }
  0x19   :  { %275 = vmatpush.bf16.msrb.mxu0 %v728_v44 }
  0x1a   :  { %v95_v9 = vmul.f32 %v754_v6, %v94_v8  ;;  %318 = vmatpush.bf16.msrb.mxu2 %v729_v43 }
  0x1b   :  { %340 = vmatpush.bf16.msrb.mxu3 %v729_v43 }
  0x1c   :  { %v96_v10 = vadd.f32 %v754_v6, %v95_v9  ;;  %297 = vmatpush.bf16.msrb.mxu1 %v728_v44 }
  0x1e   :  { %v98_v11 = vsel %vm97_vm1, %v754_v6, %v96_v10  ;;  %319 = vmatpush.bf16.msrb.mxu2 %v728_v44 }
  0x1f   :  { %341 = vmatpush.bf16.msrb.mxu3 %v728_v44 }
  0x85   :  { %v91_v12 = vpop.xlane.xlu0 %90 }
  0x86   :  { %v99_v13 = vmul.f32 %v98_v11, %v91_v12 }
  0x88   :  { %v100_v14 = vsub.f32 %v84_v0, %v99_v13  ;;  %v101_v15 = vsub.f32 %v85_v1, %v99_v13 }
  0x8a   :  { %v102_v16 = vmul.f32 %v100_v14, %v100_v14  ;;  %v103_v17 = vmul.f32 %v101_v15, %v101_v15 }
  0x8c   :  { %v104_v18 = vsel %vm86_vm0, %v102_v16, 0.0  ;;  %v105_v19 = vsel %vm86_vm0, %v103_v17, 0.0 }
  0x8d   :  { %v106_v20 = vadd.f32 %v105_v19, %v104_v18 }
  0x8f   :  { %107 = vadd.xlane.f32.xlu0 %v106_v20 }
 0x102   :  { %v108_v23 = vpop.xlane.xlu0 %107 }
 0x103   :  { %v109_v24 = vmul.f32 %v108_v23, %v98_v11 }
 0x105   :  { %v111_v25 = vadd.f32 1e-05, %v109_v24 }
 0x107   :  { %755 = vrsqrt.f32 %v111_v25  ;;  %vm118_vm3 = vweird.f32 %v111_v25 }
 0x10d   :  { %v756_v26 = vpop.eup %755 }
 0x10e   :  { %v113_v27 = vmul.f32 %v756_v26, %v111_v25  ;;  %vm119_vm2 = vweird.f32 %v756_v26 }
 0x10f   :  { %vm120_vm4 = vmor %vm118_vm3, %vm119_vm2 }
 0x110   :  { %v114_v28 = vmul.f32 %v756_v26, %v113_v27 }
 0x112   :  { %v115_v29 = vmul.f32 0.5, %v114_v28 }
 0x114   :  { %v116_v30 = vsub.f32 1.5, %v115_v29 }
 0x116   :  { %v117_v32 = vmul.f32 %v756_v26, %v116_v30 }
 0x118   :  { %v121_v33 = vsel %vm120_vm4, %v756_v26, %v117_v32 }
 0x119   :  { %v122_v34 = vmul.f32 %v121_v33, %v110_v31 }
 0x11b   :  { %125 = vperm.xlu1 %746, %v122_v34  }
 0x123   :  { %747 = vset.pattern.permute.xlu1 %v904_v22 }
 0x124   :  { %132 = vperm.xlu1 %747, %v110_v31  }
 0x18d   :  { %v126_v36 = vpop.permute.xlu1 %125 }
 0x18e   :  { %v128_v37 = vmul.f32 %v126_v36, %v100_v14  ;;  %v129_v38 = vmul.f32 %v126_v36, %v101_v15 }
 0x196   :  { %v133_v39 = vpop.permute.xlu1 %132 }
 0x197   :  { %v135_v40 = vadd.f32 %v133_v39, %v128_v37  ;;  %v136_v41 = vadd.f32 %v133_v39, %v129_v38 }
 0x199   :  { %v137_v42 = vpack.c.bf16 %v136_v41, %v135_v40 }
 0x19b   :  { %678 = vmatmul.msk.bf16.vlgmr.msra.gmra.mxu0 %vm86_vm0, %v137_v42 }
 0x218   :  { %v160_v45 = vpop.f32.mrf.mxu0 }
 0x219   :  { %v161_v47 = vadd.f32 %v749_v46, %v160_v45 }
 0x21b   :  { %757 = vtanh.f32 %v161_v47  ;;  %v195_v50 = vrot.slane %v161_v47, 1  ;;  %v217_v51 = vrot.slane %v161_v47, 2  ;;  %v239_v52 = vrot.slane %v161_v47, 3 }
 0x21c   :  { %v261_v53 = vrot.slane %v161_v47, 4  ;;  %v283_v54 = vrot.slane %v161_v47, 5  ;;  %v305_v60 = vrot.slane %v161_v47, 6  ;;  %v327_v0 = vrot.slane %v161_v47, 7 }
 0x220   :  { %v162_v48 = vpop.f32.mrf.mxu0 }
 0x221   :  { %v163_v49 = vadd.f32 %v749_v46, %v162_v48  ;;  %v758_v5 = vpop.eup %757  ;;  %v731_v48 = vld [vmem:[#allocation5 + $0x8] sm:$0xff] }
 0x222   :  { %v171_v8 = vpack.c.bf16 %v758_v5, %v758_v5  ;;  %408 = vmatpush.bf16.msra.mxu0 %v731_v48 }
 0x223   :  { %759 = vtanh.f32 %v163_v49  ;;  %v196_v55 = vsel %vm178_vm5, %v163_v49, %v195_v50  ;;  %v218_v56 = vrot.slane %v163_v49, 1  ;;  %v240_v57 = vrot.slane %v163_v49, 2 }
 0x224   :  { %v262_v58 = vrot.slane %v163_v49, 3  ;;  %v284_v59 = vrot.slane %v163_v49, 4  ;;  %v306_v61 = vrot.slane %v163_v49, 5  ;;  %v328_v1 = vrot.slane %v163_v49, 6 }
 0x225   :  { %v219_v62 = vsel %vm178_vm5, %v218_v56, %v217_v51  ;;  %v241_v63 = vsel %vm178_vm5, %v240_v57, %v239_v52  ;;  %v175_v13 = vunpack.c.l.b16 %v171_v8 }
 0x226   :  { %v263_v2 = vsel %vm178_vm5, %v262_v58, %v261_v53  ;;  %v285_v3 = vsel %vm178_vm5, %v284_v59, %v283_v54  ;;  %v307_v4 = vsel %vm178_vm5, %v306_v61, %v305_v60  ;;  %v998_v6 = vsel %vm178_vm5, %v328_v1, %v327_v0  ;;  %v730_v58 = vld [vmem:[#allocation5] sm:$0xff]  ;;  %v733_v59 = vld [vmem:[#allocation7 + $0x8] sm:$0xff] }
 0x227   :  { %409 = vmatpush.bf16.msra.mxu0 %v730_v58 }
 0x229   :  { %v760_v7 = vpop.eup %759 }
 0x22a   :  { %v172_v9 = vpack.c.bf16 %v760_v7, %v760_v7  ;;  %v350_v10 = vrot.slane %v760_v7, 7 }
 0x22c   :  { %v176_v11 = vunpack.c.l.b16 %v172_v9  ;;  %v351_v12 = vsel %vm178_vm5, %v350_v10, %v758_v5 }
 0x22e   :  { %v177_v14 = vrot.slane %v176_v11, 7 }
 0x230   :  { %v179_v15 = vsel %vm178_vm5, %v177_v14, %v175_v13 }
 0x231   :  { %v180_v16 = vpack.c.b16 %v179_v15, %v179_v15 }
 0x233   :  { %687 = vmatmul.msk.bf16.vlgmr.msra.gmra.mxu1 %vm198_vm6, %v180_v16 }
 0x234   :  { %446 = vmatpush.bf16.msra.mxu1 %v733_v59 }
 0x2b0   :  { %v211_v17 = vpop.f32.mrf.mxu1 }
 0x2b1   :  { %v212_v18 = vadd.f32 %v211_v17, %v196_v55 }
 0x2b3   :  { %761 = vtanh.f32 %v212_v18 }
 0x2b8   :  { %v213_v19 = vpop.f32.mrf.mxu1 }
 0x2b9   :  { %v762_v20 = vpop.eup %761 }
 0x2ba   :  { %v354_v21 = vrot.slane %v762_v20, 6  ;;  %v216_v22 = vpack.c.bf16 %v762_v20, %v762_v20 }
 0x2bc   :  { %v372_v23 = vsel %vm371_vm7, %v351_v12, %v354_v21  ;;  %688 = vmatmul.msk.bf16.vlgmr.msra.gmra.mxu2 %vm198_vm6, %v216_v22 }
 0x2bd   :  { %466 = vmatpush.bf16.msra.mxu2 %v733_v59 }
 0x33f   :  { %v233_v24 = vpop.f32.mrf.mxu2 }
 0x340   :  { %v234_v25 = vadd.f32 %v233_v24, %v219_v62 }
 0x342   :  { %763 = vtanh.f32 %v234_v25 }
 0x347   :  { %v235_v26 = vpop.f32.mrf.mxu2 }
 0x348   :  { %v764_v27 = vpop.eup %763 }
 0x349   :  { %v357_v28 = vrot.slane %v764_v27, 4  ;;  %v238_v29 = vpack.c.bf16 %v764_v27, %v764_v27 }
 0x34b   :  { %689 = vmatmul.msk.bf16.vlgmr.msra.gmra.mxu3 %vm198_vm6, %v238_v29  ;;  %v374_v30 = vsel %vm373_vm8, %v372_v23, %v357_v28 }
 0x34c   :  { %486 = vmatpush.bf16.msra.mxu3 %v733_v59 }
 0x3ce   :  { %v255_v31 = vpop.f32.mrf.mxu3 }
 0x3cf   :  { %v256_v32 = vadd.f32 %v255_v31, %v241_v63 }
 0x3d1   :  { %765 = vtanh.f32 %v256_v32 }
 0x3d6   :  { %v257_v33 = vpop.f32.mrf.mxu3 }
 0x3d7   :  { %v766_v34 = vpop.eup %765 }
 0x3d8   :  { %v360_v35 = vrot.slane %v766_v34, 2  ;;  %v260_v36 = vpack.c.bf16 %v766_v34, %v766_v34 }
 0x3da   :  { %690 = vmatmul.msk.bf16.vlgmr.msrb.gmra.mxu0 %vm198_vm6, %v260_v36  ;;  %v376_v37 = vsel %vm375_vm9, %v374_v30, %v360_v35 }
 0x3db   :  { %504 = vmatpush.bf16.msrb.mxu0 %v733_v59 }
 0x457   :  { %v277_v38 = vpop.f32.mrf.mxu0 }
 0x458   :  { %v278_v39 = vadd.f32 %v277_v38, %v263_v2 }
 0x45a   :  { %767 = vtanh.f32 %v278_v39 }
 0x45f   :  { %v279_v40 = vpop.f32.mrf.mxu0 }
 0x460   :  { %v768_v41 = vpop.eup %767 }
 0x461   :  { %v282_v42 = vpack.c.bf16 %v768_v41, %v768_v41 }
 0x463   :  { %691 = vmatmul.msk.bf16.vlgmr.msrb.gmra.mxu1 %vm198_vm6, %v282_v42 }
 0x4e0   :  { %v299_v43 = vpop.f32.mrf.mxu1 }
 0x4e1   :  { %v300_v44 = vadd.f32 %v299_v43, %v285_v3  ;;  %v732_v3 = vld [vmem:[#allocation7] sm:$0xff] }
 0x4e2   :  { %447 = vmatpush.bf16.msra.mxu1 %v732_v3  ;;  %467 = vmatpush.bf16.msra.mxu2 %v732_v3 }
 0x4e3   :  { %769 = vtanh.f32 %v300_v44  ;;  %487 = vmatpush.bf16.msra.mxu3 %v732_v3  ;;  %505 = vmatpush.bf16.msrb.mxu0 %v732_v3 }
 0x4e6   :  { %525 = vmatpush.bf16.msrb.mxu1 %v733_v59 }
 0x4e8   :  { %v301_v45 = vpop.f32.mrf.mxu1 }
 0x4e9   :  { %v770_v46 = vpop.eup %769 }
 0x4ea   :  { %v304_v47 = vpack.c.bf16 %v770_v46, %v770_v46  ;;  %v363_v51 = vrot.slane %v770_v46, 6  ;;  %526 = vmatpush.bf16.msrb.mxu1 %v732_v3  ;;  %v905_v46 = vmov 2.0  }
 0x4ec   :  { %692 = vmatmul.msk.bf16.vlgmr.msrb.gmra.mxu2 %vm198_vm6, %v304_v47  ;;  %v377_v56 = vsel %vm371_vm7, %v768_v41, %v363_v51 }
 0x4ed   :  { %545 = vmatpush.bf16.msrb.mxu2 %v733_v59 }
 0x4f1   :  { %546 = vmatpush.bf16.msrb.mxu2 %v732_v3 }
 0x56f   :  { %v321_v49 = vpop.f32.mrf.mxu2 }
 0x570   :  { %v322_v50 = vadd.f32 %v321_v49, %v307_v4  ;;  %v750_v4 = vld [vmem:[%s1050_s2 + $0x1] ss:$0 sm:$0xff] }
 0x572   :  { %771 = vtanh.f32 %v322_v50 }
 0x577   :  { %v323_v52 = vpop.f32.mrf.mxu2 }
 0x578   :  { %v772_v53 = vpop.eup %771 }
 0x579   :  { %v366_v54 = vrot.slane %v772_v53, 4  ;;  %v326_v55 = vpack.c.bf16 %v772_v53, %v772_v53 }
 0x57b   :  { %693 = vmatmul.msk.bf16.vlgmr.msrb.gmra.mxu3 %vm198_vm6, %v326_v55  ;;  %v378_v57 = vsel %vm373_vm8, %v377_v56, %v366_v54 }
 0x57c   :  { %565 = vmatpush.bf16.msrb.mxu3 %v733_v59 }
 0x580   :  { %566 = vmatpush.bf16.msrb.mxu3 %v732_v3 }
 0x5fe   :  { %v343_v60 = vpop.f32.mrf.mxu3 }
 0x5ff   :  { %v344_v61 = vadd.f32 %v343_v60, %v998_v6 }
 0x601   :  { %773 = vtanh.f32 %v344_v61 }
 0x606   :  { %v345_v62 = vpop.f32.mrf.mxu3 }
 0x607   :  { %v774_v63 = vpop.eup %773 }
 0x608   :  { %v369_v0 = vrot.slane %v774_v63, 2 }
 0x60a   :  { %v379_v1 = vsel %vm375_vm9, %v378_v57, %v369_v0 }
 0x60b   :  { %v380_v2 = vpack.c.bf16 %v379_v1, %v376_v37 }
 0x60d   :  { %702 = vmatmul.msk.bf16.vlgmr.msra.gmra.mxu0 %vm198_vm6, %v380_v2 }
 0x68a   :  { %v411_v5 = vpop.f32.mrf.mxu0 }
 0x68b   :  { %v412_v6 = vadd.f32 %v750_v4, %v411_v5 }
 0x68d   :  { %775 = vtanh.f32 %v412_v6  ;;  %v435_v9 = vrot.slane %v412_v6, 2  ;;  %v455_v15 = vrot.slane %v412_v6, 4  ;;  %v475_v21 = vrot.slane %v412_v6, 6 }
 0x692   :  { %v413_v27 = vpop.f32.mrf.mxu0 }
 0x693   :  { %v776_v7 = vpop.eup %775  ;;  %v414_v28 = vadd.f32 %v750_v4, %v413_v27 }
 0x694   :  { %v421_v8 = vpack.c.bf16 %v776_v7, %v776_v7 }
 0x695   :  { %v514_v34 = vrot.slane %v414_v28, 2  ;;  %v534_v40 = vrot.slane %v414_v28, 4  ;;  %v554_v47 = vrot.slane %v414_v28, 6 }
 0x696   :  { %711 = vmatmul.msk.bf16.vlgmr.msra.gmra.mxu1 %vm198_vm6, %v421_v8  ;;  %v735_v8 = vld [vmem:[%s1057_s9 + $0x8] sm:$0xff] }
 0x697   :  { %647 = vmatpush.bf16.msra.mxu0 %v735_v8 }
 0x713   :  { %v449_v10 = vpop.f32.mrf.mxu1 }
 0x714   :  { %v450_v11 = vadd.f32 %v449_v10, %v435_v9 }
 0x716   :  { %777 = vtanh.f32 %v450_v11  ;;  %v734_v11 = vld [vmem:[%s1057_s9] sm:$0xff] }
 0x717   :  { %648 = vmatpush.bf16.msra.mxu0 %v734_v11 }
 0x71b   :  { %v451_v12 = vpop.f32.mrf.mxu1 }
 0x71c   :  { %v778_v13 = vpop.eup %777 }
 0x71d   :  { %v454_v14 = vpack.c.bf16 %v778_v13, %v778_v13 }
 0x71f   :  { %712 = vmatmul.msk.bf16.vlgmr.msra.gmra.mxu2 %vm198_vm6, %v454_v14 }
 0x7a2   :  { %v469_v16 = vpop.f32.mrf.mxu2 }
 0x7a3   :  { %v470_v17 = vadd.f32 %v469_v16, %v455_v15 }
 0x7a5   :  { %779 = vtanh.f32 %v470_v17 }
 0x7aa   :  { %v471_v18 = vpop.f32.mrf.mxu2 }
 0x7ab   :  { %v780_v19 = vpop.eup %779 }
 0x7ac   :  { %v474_v20 = vpack.c.bf16 %v780_v19, %v780_v19 }
 0x7ae   :  { %713 = vmatmul.msk.bf16.vlgmr.msra.gmra.mxu3 %vm198_vm6, %v474_v20  ;;  %v599_v20 = vld [vmem:[%s1051_s3] sm:$0x1] }
 0x831   :  { %v489_v22 = vpop.f32.mrf.mxu3 }
 0x832   :  { %v490_v23 = vadd.f32 %v489_v22, %v475_v21 }
 0x834   :  { %781 = vtanh.f32 %v490_v23 }
 0x839   :  { %v491_v24 = vpop.f32.mrf.mxu3 }
 0x83a   :  { %v782_v25 = vpop.eup %781 }
 0x83b   :  { %v494_v26 = vpack.c.bf16 %v782_v25, %v782_v25  ;;  %v751_v25 = vld [vmem:[%s1051_s3 + $0x1] ss:$0 sm:$0xff] }
 0x83d   :  { %714 = vmatmul.msk.bf16.vlgmr.msrb.gmra.mxu0 %vm198_vm6, %v494_v26 }
 0x8ba   :  { %v507_v29 = vpop.f32.mrf.mxu0 }
 0x8bb   :  { %v508_v30 = vadd.f32 %v507_v29, %v414_v28  ;;  %v752_v29 = vld [vmem:[%s1052_s4] ss:$0 sm:$0xff] }
 0x8bd   :  { %783 = vtanh.f32 %v508_v30 }
 0x8c2   :  { %v509_v31 = vpop.f32.mrf.mxu0 }
 0x8c3   :  { %v784_v32 = vpop.eup %783 }
 0x8c4   :  { %v512_v33 = vpack.c.bf16 %v784_v32, %v784_v32 }
 0x8c6   :  { %715 = vmatmul.msk.bf16.vlgmr.msrb.gmra.mxu1 %vm198_vm6, %v512_v33 }
 0x943   :  { %v528_v35 = vpop.f32.mrf.mxu1 }
 0x944   :  { %v529_v36 = vadd.f32 %v528_v35, %v514_v34 }
 0x946   :  { %785 = vtanh.f32 %v529_v36 }
 0x94b   :  { %v530_v37 = vpop.f32.mrf.mxu1 }
 0x94c   :  { %v786_v38 = vpop.eup %785 }
 0x94d   :  { %v533_v39 = vpack.c.bf16 %v786_v38, %v786_v38 }
 0x94f   :  { %716 = vmatmul.msk.bf16.vlgmr.msrb.gmra.mxu2 %vm198_vm6, %v533_v39 }
 0x9d2   :  { %v548_v41 = vpop.f32.mrf.mxu2 }
 0x9d3   :  { %v549_v42 = vadd.f32 %v548_v41, %v534_v40 }
 0x9d5   :  { %787 = vtanh.f32 %v549_v42 }
 0x9d6   :  { %789 = vrcp.f32 %v905_v46 }
 0x9da   :  { %v550_v43 = vpop.f32.mrf.mxu2 }
 0x9db   :  { %v788_v44 = vpop.eup %787 }
 0x9dc   :  { %v553_v45 = vpack.c.bf16 %v788_v44, %v788_v44  ;;  %v790_v49 = vpop.eup %789 }
 0x9dd   :  { %v582_v51 = vmul.f32 2.0, %v790_v49  ;;  %vm586_vm11 = vweird.f32 %v790_v49 }
 0x9de   :  { %717 = vmatmul.msk.bf16.vlgmr.msrb.gmra.mxu3 %vm198_vm6, %v553_v45 }
 0x9df   :  { %v583_v52 = vsub.f32 1.0, %v582_v51 }
 0x9e1   :  { %v584_v57 = vmul.f32 %v790_v49, %v583_v52 }
 0x9e3   :  { %v585_v60 = vadd.f32 %v790_v49, %v584_v57 }
 0x9e5   :  { %v587_v63 = vsel %vm586_vm11, %v790_v49, %v585_v60 }
 0xa61   :  { %v568_v48 = vpop.f32.mrf.mxu3 }
 0xa62   :  { %v569_v50 = vadd.f32 %v568_v48, %v554_v47 }
 0xa64   :  { %791 = vtanh.f32 %v569_v50 }
 0xa69   :  { %v570_v53 = vpop.f32.mrf.mxu3 }
 0xa6a   :  { %v792_v54 = vpop.eup %791 }
 0xa6b   :  { %v574_v55 = vsel %vm573_vm10, %v792_v54, 0.0 }
 0xa6c   :  { %v575_v56 = vrot.slane %v574_v55, 4 }
 0xa6e   :  { %v576_v58 = vadd.f32 %v575_v56, %v574_v55 }
 0xa70   :  { %v577_v59 = vrot.slane %v576_v58, 2 }
 0xa72   :  { %v578_v61 = vadd.f32 %v577_v59, %v576_v58 }
 0xa74   :  { %v579_v62 = vrot.slane %v578_v61, 1 }
 0xa76   :  { %v580_v0 = vadd.f32 %v579_v62, %v578_v61 }
 0xa78   :  { %v588_v1 = vmul.f32 %v587_v63, %v580_v0 }
 0xa7a   :  { %v589_v2 = vsub.f32 %v792_v54, %v588_v1 }
 0xa7c   :  { %v590_v3 = vmul.f32 %v589_v2, %v589_v2 }
 0xa7e   :  { %v591_v4 = vsel %vm573_vm10, %v590_v3, 0.0 }
 0xa7f   :  { %v592_v5 = vrot.slane %v591_v4, 4 }
 0xa81   :  { %v593_v6 = vadd.f32 %v592_v5, %v591_v4 }
 0xa83   :  { %v594_v7 = vrot.slane %v593_v6, 2 }
 0xa85   :  { %v595_v9 = vadd.f32 %v594_v7, %v593_v6 }
 0xa87   :  { %v596_v10 = vrot.slane %v595_v9, 1 }
 0xa89   :  { %v597_v12 = vadd.f32 %v596_v10, %v595_v9 }
 0xa8b   :  { %v598_v13 = vmul.f32 %v597_v12, %v587_v63 }
 0xa8d   :  { %v600_v14 = vadd.f32 1e-05, %v598_v13 }
 0xa8f   :  { %793 = vrsqrt.f32 %v600_v14  ;;  %vm607_vm13 = vweird.f32 %v600_v14 }
 0xa95   :  { %v794_v15 = vpop.eup %793 }
 0xa96   :  { %v602_v16 = vmul.f32 %v794_v15, %v600_v14  ;;  %vm608_vm12 = vweird.f32 %v794_v15 }
 0xa97   :  { %vm609_vm14 = vmor %vm607_vm13, %vm608_vm12 }
 0xa98   :  { %v603_v17 = vmul.f32 %v794_v15, %v602_v16 }
 0xa9a   :  { %v604_v18 = vmul.f32 0.5, %v603_v17 }
 0xa9c   :  { %v605_v19 = vsub.f32 1.5, %v604_v18 }
 0xa9e   :  { %v606_v21 = vmul.f32 %v794_v15, %v605_v19 }
 0xaa0   :  { %v610_v22 = vsel %vm609_vm14, %v794_v15, %v606_v21 }
 0xaa1   :  { %v611_v23 = vmul.f32 %v610_v22, %v599_v20 }
 0xaa3   :  { %v612_v24 = vperm.slane %v611_v23, 0 }
 0xaa5   :  { %v613_v26 = vmul.f32 %v612_v24, %v589_v2 }
 0xaa7   :  { %v616_v27 = vadd.f32 %v751_v25, %v613_v26 }
 0xaa9   :  { %v617_v28 = vpack.c.bf16 %v616_v27, %v616_v27 }
 0xaab   :  { %726 = vmatmul.msk.bf16.vlgmr.msra.gmra.mxu0 %vm198_vm6, %v617_v28 }
 0xb28   :  { %v650_v30 = vpop.f32.mrf.mxu0 }
 0xb29   :  { %v651_v31 = vadd.f32 %v752_v29, %v650_v30 }
 0xb2b   :  { %655 = vst.msk [vmem:[#allocation8] sm:$0x3] %vm654_vm15, %v651_v31 }
 0xb2c   :  { %666 = dma.vmem_to_hbm [thread:$0]  %s662_s25, 32, %s664_s7, [#allocation4]  }
 0xb30   :  { %v652_v32 = vpop.f32.mrf.mxu0 }
 0xb31   :  { %895 = dma.done.wait [#allocation4], 32  }
 0xb32   :  { %896 = vsyncadd [#allocation4], 4294967264 }
 0xb33   :  { %671 = vsyncpa [#allocation3], 1 }
 0xb34   :  { %672 = vsyncpa [#allocation6], 1 }
 0xb35   :  { %673 = vsyncpa [#allocation4], 1 }

</bundles_post_ra>
